<compile_context>
chip_gen: v7x
topology: tpu7x:2x2x1
jax: 0.10.0
libtpu: 0.0.40
codegen_flags: <defaults>
</compile_context>

<pallas_src>
import math
import functools

import numpy as np
import jax
import jax.numpy as jnp
from jax.experimental import pallas as pl
from jax.experimental.pallas import tpu as pltpu

_BN_EPS = 1e-5


# ---------------------------------------------------------------------------
# Pallas kernels
# ---------------------------------------------------------------------------

def _stream_kernel(pin_ref, w_in_ref, b_in_ref, w_sep_ref, b_sep_ref,
                   w_res_ref, b_res_ref, m1_ref, m2_ref, sel_ref, gap_ref,
                   feat_ref, *, offs1, offs2):
    """One whole Flame stream, VMEM-resident.  Layout: (channels, M) with the
    lane axis carrying M = N*H1*W1 spatial positions (stage-2 tensors keep the
    same lane width; only the first N*H2*W2 lanes are meaningful)."""
    f32 = jnp.float32
    m1 = m1_ref[...]          # (9, M) stage-1 tap validity masks (1.0 / 0.0)
    m2 = m2_ref[...]          # (9, M) stage-2 tap validity masks

    def shifted_taps(a, masks, offs):
        # tap_k[c, m] = a[c, m + off_k] when the (dy,dx) neighbour lies inside
        # the image, else 0 (== zero padding).  Lane rotate = XLU, masking = VPU.
        n = a.shape[-1]
        taps = []
        for k, off in enumerate(offs):
            r = a if off == 0 else pltpu.roll(a, shift=(-off) % n, axis=1)
            taps.append(r * masks[k:k + 1, :])
        return taps

    def conv3x3(a, w, b, masks, offs):
        # 3x3 / stride-1 / pad-1 conv (+folded BN bias) + ReLU, transposed
        # formulation: (Cout, 9C) @ (9C, M) so lanes stay dense.
        p = jnp.concatenate(shifted_taps(a, masks, offs), axis=0)   # (72, M)
        y = jnp.dot(w, p, preferred_element_type=f32) + b
        return jnp.maximum(y, 0.0)

    # IN: Conv(3->8, 3x3, s2, p1) + bias + BN + ReLU (patches im2col'd outside)
    x = jnp.maximum(
        jnp.dot(w_in_ref[0], pin_ref[0], preferred_element_type=f32)
        + b_in_ref[0], 0.0)                                         # (8, M)

    # block: Sep(8->8)+BN+ReLU, Sep(8->8)+BN+ReLU
    y = conv3x3(x, w_sep_ref[0, 0], b_sep_ref[0, 0], m1, offs1)
    y = conv3x3(y, w_sep_ref[0, 1], b_sep_ref[0, 1], m1, offs1)

    # MaxPool(3, s2, p1): stride-1 windowed max (masked taps set to 0, which is
    # exact because y >= 0 after ReLU and the centre tap is always valid) ...
    pooled = None
    for t in shifted_taps(y, m1, offs1):
        pooled = t if pooled is None else jnp.maximum(pooled, t)
    # ... fused with the residual Conv(8->8, 1x1, s2)+bias and the residual
    # add via one stride-2 selection matmul:
    #   (maxpool(y) + W_res @ x) @ S + b_res
    #      == maxpool(y)|s2  +  W_res @ (x|s2) + b_res
    resid = jnp.dot(w_res_ref[0], x, preferred_element_type=f32)
    z = jnp.dot(pooled + resid, sel_ref[...],
                preferred_element_type=f32) + b_res_ref[0]          # (8, M)

    # block2: Sep(8->8)+BN+ReLU   (only the first N*H2*W2 lanes are valid;
    # invalid lanes are masked out of the taps and never reach the output)
    y3 = conv3x3(z, w_sep_ref[0, 2], b_sep_ref[0, 2], m2, offs2)

    # Global average pool per image, fused as one small matmul.
    feat_ref[0] = jnp.dot(y3, gap_ref[...], preferred_element_type=f32)  # (8,N)


def _head_kernel(f_ref, w_ref, b_ref, o_ref):
    # concat(feat_stream1, feat_stream2) -> Linear(16 -> 3).
    # TODO(synk): nn.Dropout(0.5) in self.out is eval-mode identity here
    # (train-mode PyTorch dropout RNG has no exact Pallas equivalent).
    o_ref[...] = (jnp.dot(w_ref[0], f_ref[0], preferred_element_type=jnp.float32)
                  + jnp.dot(w_ref[1], f_ref[1], preferred_element_type=jnp.float32)
                  + b_ref[...])


# ---------------------------------------------------------------------------
# Wrapper-side (one-time, tiny) input prep and geometry constants
# ---------------------------------------------------------------------------

def _im2col_T(x_nchw, k, stride, pad):
    """NCHW -> (k*k*C, N*Ho*Wo) transposed im2col; rows ordered (kh, kw, c),
    columns ordered (n, ho, wo) - the lane-dense layout used by the kernel."""
    N, C, H, W = x_nchw.shape
    xp = jnp.pad(x_nchw, ((0, 0), (0, 0), (pad, pad), (pad, pad)))
    Ho = (H + 2 * pad - k) // stride + 1
    Wo = (W + 2 * pad - k) // stride + 1
    taps = [xp[:, :, kh:kh + stride * Ho:stride, kw:kw + stride * Wo:stride]
            for kh in range(k) for kw in range(k)]            # each (N,C,Ho,Wo)
    col = jnp.stack(taps, axis=0)                             # (9, N, C, Ho, Wo)
    col = jnp.transpose(col, (0, 2, 1, 3, 4))                 # (9, C, N, Ho, Wo)
    return col.reshape(k * k * C, N * Ho * Wo), (Ho, Wo)


def _geometry_constants(N, H1, W1, H2, W2):
    """Tap validity masks, stride-2 selection matrix and GAP matrix (built once
    at trace time with numpy; shapes are tiny)."""
    M = N * H1 * W1

    def conv_masks(h, w):
        m = np.zeros((9, M), np.float32)
        for n in range(N):
            for i in range(h):
                for j in range(w):
                    idx = n * h * w + i * w + j
                    for kh in range(3):
                        for kw in range(3):
                            if 0 <= i + kh - 1 < h and 0 <= j + kw - 1 < w:
                                m[kh * 3 + kw, idx] = 1.0
        return m

    sel = np.zeros((M, M), np.float32)     # stride-2 subsample (cols >= M2 = 0)
    gap = np.zeros((M, N), np.float32)     # per-image mean over H2*W2 lanes
    for n in range(N):
        for i in range(H2):
            for j in range(W2):
                dst = n * H2 * W2 + i * W2 + j
                src = n * H1 * W1 + (2 * i) * W1 + (2 * j)
                sel[src, dst] = 1.0
                gap[dst, n] = 1.0 / (H2 * W2)

    offs1 = tuple((kh - 1) * W1 + (kw - 1) for kh in range(3) for kw in range(3))
    offs2 = tuple((kh - 1) * W2 + (kw - 1) for kh in range(3) for kw in range(3))
    return (jnp.asarray(conv_masks(H1, W1)), jnp.asarray(conv_masks(H2, W2)),
            jnp.asarray(sel), jnp.asarray(gap), offs1, offs2)


# ---------------------------------------------------------------------------
# Flame_two_stream forward
# ---------------------------------------------------------------------------

def two_stream_forward(params, x1_nchw, x2_nchw, mode=None):
    """Flame_two_stream.forward.  `mode` kept for signature parity but (as in
    the PyTorch module) stream1 always runs 'rgb' on x1, stream2 'ir' on x2."""
    del mode
    x1 = x1_nchw.astype(jnp.float32)
    x2 = x2_nchw.astype(jnp.float32)
    N = x1.shape[0]

    # im2col for the stride-2 IN conv of both streams (tiny, one-time per fwd).
    p1, (H1, W1) = _im2col_T(x1, 3, 2, 1)
    p2, _ = _im2col_T(x2, 3, 2, 1)
    K = p1.shape[0]                                   # 27
    Kp = ((K + 7) // 8) * 8                           # 32 (matches w_in padding)
    pin = jnp.pad(jnp.stack([p1, p2], axis=0), ((0, 0), (0, Kp - K), (0, 0)))

    H2 = (H1 - 1) // 2 + 1
    W2 = (W1 - 1) // 2 + 1
    M = N * H1 * W1
    m1, m2, sel, gap, offs1, offs2 = _geometry_constants(N, H1, W1, H2, W2)

    feats = pl.pallas_call(
        functools.partial(_stream_kernel, offs1=offs1, offs2=offs2),
        out_shape=jax.ShapeDtypeStruct((2, 8, N), jnp.float32),
        grid=(2,),
        in_specs=[
            pl.BlockSpec((1, Kp, M), lambda s: (s, 0, 0)),        # pin
            pl.BlockSpec((1, 8, Kp), lambda s: (s, 0, 0)),        # w_in
            pl.BlockSpec((1, 8, 1), lambda s: (s, 0, 0)),         # b_in
            pl.BlockSpec((1, 3, 8, 72), lambda s: (s, 0, 0, 0)),  # w_sep
            pl.BlockSpec((1, 3, 8, 1), lambda s: (s, 0, 0, 0)),   # b_sep
            pl.BlockSpec((1, 8, 8), lambda s: (s, 0, 0)),         # w_res
            pl.BlockSpec((1, 8, 1), lambda s: (s, 0, 0)),         # b_res
            pl.BlockSpec((9, M), lambda s: (0, 0)),               # masks stage 1
            pl.BlockSpec((9, M), lambda s: (0, 0)),               # masks stage 2
            pl.BlockSpec((M, M), lambda s: (0, 0)),               # stride-2 sel
            pl.BlockSpec((M, N), lambda s: (0, 0)),               # GAP matrix
        ],
        out_specs=pl.BlockSpec((1, 8, N), lambda s: (s, 0, 0)),
        compiler_params=pltpu.CompilerParams(
            dimension_semantics=("parallel",)),       # v7x: one stream per TC
    )(pin, params["w_in"], params["b_in"], params["w_sep"], params["b_sep"],
      params["w_res"], params["b_res"], m1, m2, sel, gap)

    out_t = pl.pallas_call(
        _head_kernel,
        out_shape=jax.ShapeDtypeStruct((3, N), jnp.float32),
    )(feats, params["w_head"], params["b_head"])
    return out_t.T                                    # (N, 3)


# ---------------------------------------------------------------------------
# Parameter construction (torch layouts) + one-time folding to kernel layouts
# ---------------------------------------------------------------------------

def _bn_init(key, c):
    k1, k2, k3, k4 = jax.random.split(key, 4)
    return {
        "gamma": 1.0 + 0.1 * jax.random.normal(k1, (c,), jnp.float32),
        "beta": 0.1 * jax.random.normal(k2, (c,), jnp.float32),
        "mean": 0.1 * jax.random.normal(k3, (c,), jnp.float32),
        "var": jnp.abs(jax.random.normal(k4, (c,), jnp.float32)) + 0.5,
    }


def init_flame_params(key):
    keys = iter(jax.random.split(key, 32))
    nk = lambda: next(keys)

    def conv_w(cout, cin, k):
        std = 1.0 / math.sqrt(cin * k * k)
        return jax.random.normal(nk(), (cout, cin, k, k), jnp.float32) * std

    def vec(c, fan_in):
        return jax.random.normal(nk(), (c,), jnp.float32) / math.sqrt(fan_in)

    def sep(c):
        dw = jax.random.normal(nk(), (c, 1, 3, 3), jnp.float32) / 3.0
        pw = jax.random.normal(nk(), (c, c, 1, 1), jnp.float32) / math.sqrt(c)
        return dw, pw

    p = {}
    p["in_conv_w"] = conv_w(8, 3, 3)
    p["in_conv_b"] = vec(8, 27)
    p["in_bn"] = _bn_init(nk(), 8)
    p["sep1_dw"], p["sep1_pw"] = sep(8)
    p["bn1"] = _bn_init(nk(), 8)
    p["sep2_dw"], p["sep2_pw"] = sep(8)
    p["bn2"] = _bn_init(nk(), 8)
    p["res_w"] = conv_w(8, 8, 1)
    p["res_b"] = vec(8, 8)
    p["sep3_dw"], p["sep3_pw"] = sep(8)
    p["bn3"] = _bn_init(nk(), 8)
    # NOTE: Flame.IN_both (6->8 conv) is dead code in Flame_two_stream.forward
    # ('rgb'/'ir' only), so it is not materialized here.
    return p


def init_two_stream_params(key):
    k1, k2, k3, k4 = jax.random.split(key, 4)
    return {
        "stream1": init_flame_params(k1),
        "stream2": init_flame_params(k2),
        "out_w": jax.random.normal(k3, (3, 16), jnp.float32) / math.sqrt(16),
        "out_b": jax.random.normal(k4, (3,), jnp.float32) / math.sqrt(16),
    }


def _fold_bn(bn):
    scale = bn["gamma"] / jnp.sqrt(bn["var"] + _BN_EPS)
    shift = bn["beta"] - bn["mean"] * scale
    return scale, shift


def _conv_to_tmat(w):
    """(cout, cin, kh, kw) torch conv weight -> (cout, kh*kw*cin) with column
    order (kh, kw, cin), matching the kernel's tap/patch row ordering."""
    cout, cin, kh, kw = w.shape
    return jnp.transpose(w, (0, 2, 3, 1)).reshape(cout, kh * kw * cin)


def _sep_to_dense(dw, pw):
    """Depthwise (C,1,3,3) followed by pointwise (C,C,1,1) == dense 3x3 conv
    (both linear, bias-free, no nonlinearity in between)."""
    return pw[:, :, 0, 0][:, :, None, None] * dw[:, 0, :, :][None, :, :, :]


def prepare_flame_params(p):
    scale_in, shift_in = _fold_bn(p["in_bn"])
    w_in = _conv_to_tmat(p["in_conv_w"]) * scale_in[:, None]          # (8, 27)
    w_in = jnp.pad(w_in, ((0, 0), (0, 32 - w_in.shape[1])))           # (8, 32)
    b_in = (p["in_conv_b"] * scale_in + shift_in).reshape(8, 1)

    ws, bs = [], []
    for dw, pw, bn in ((p["sep1_dw"], p["sep1_pw"], p["bn1"]),
                       (p["sep2_dw"], p["sep2_pw"], p["bn2"]),
                       (p["sep3_dw"], p["sep3_pw"], p["bn3"])):
        scale, shift = _fold_bn(bn)
        ws.append(_conv_to_tmat(_sep_to_dense(dw, pw)) * scale[:, None])  # (8,72)
        bs.append(shift.reshape(8, 1))
    return {
        "w_in": w_in, "b_in": b_in,
        "w_sep": jnp.stack(ws, 0), "b_sep": jnp.stack(bs, 0),
        "w_res": p["res_w"][:, :, 0, 0], "b_res": p["res_b"].reshape(8, 1),
    }


def prepare_two_stream_params(p):
    s1 = prepare_flame_params(p["stream1"])
    s2 = prepare_flame_params(p["stream2"])
    out = {k: jnp.stack([s1[k], s2[k]], 0).astype(jnp.float32) for k in s1}
    wt = p["out_w"].astype(jnp.float32)                               # (3, 16)
    out["w_head"] = jnp.stack([wt[:, :8], wt[:, 8:]], 0)              # (2, 3, 8)
    out["b_head"] = p["out_b"].reshape(3, 1).astype(jnp.float32)
    return out


# ---------------------------------------------------------------------------

if __name__ == "__main__":
    root = jax.random.PRNGKey(0)
    kp, kx1, kx2 = jax.random.split(root, 3)

    torch_like_params = init_two_stream_params(kp)
    params = prepare_two_stream_params(torch_like_params)   # one-time folding

    # NCHW inputs, PyTorch convention: batch=2, 3 channels, 16x16 spatial.
    x1 = jax.random.normal(kx1, (2, 3, 16, 16), jnp.float32)
    x2 = jax.random.normal(kx2, (2, 3, 16, 16), jnp.float32)

    fwd = jax.jit(lambda pr, a, b: two_stream_forward(pr, a, b, mode="eval"))
    out = jax.block_until_ready(fwd(params, x1, x2))

    assert out.shape == (2, 3), out.shape
    assert bool(jnp.all(jnp.isfinite(out)))
    print("KERNEL_OK")
</pallas_src>

<mosaic_0001>
module attributes {stable_mosaic.version = 11 : i64} {
  func.func @_head_kernel(%arg0: memref<2x8x2xf32, #tpu.memory_space<vmem>>, %arg1: memref<2x3x8xf32, #tpu.memory_space<vmem>>, %arg2: memref<3x1xf32, #tpu.memory_space<vmem>>, %arg3: memref<3x2xf32, #tpu.memory_space<vmem>>) attributes {dimension_semantics = [], scalar_prefetch = 0 : i64, scratch_operands = 0 : i64, tpu.core_type = #tpu.core_type<tc>} {
    %c0 = arith.constant 0 : index
    %c0_0 = arith.constant 0 : index
    %c0_1 = arith.constant 0 : index
    %0 = vector.load %arg1[%c0, %c0_0, %c0_1] : memref<2x3x8xf32, #tpu.memory_space<vmem>>, vector<1x3x8xf32>
    %1 = vector.shape_cast %0 : vector<1x3x8xf32> to vector<3x8xf32>
    %c0_2 = arith.constant 0 : index
    %c0_3 = arith.constant 0 : index
    %c0_4 = arith.constant 0 : index
    %2 = vector.load %arg0[%c0_2, %c0_3, %c0_4] : memref<2x8x2xf32, #tpu.memory_space<vmem>>, vector<1x8x2xf32>
    %3 = vector.shape_cast %2 : vector<1x8x2xf32> to vector<8x2xf32>
    %cst = arith.constant dense<0.000000e+00> : vector<3x2xf32>
    %4 = tpu.matmul %1, %3, %cst {dimension_numbers = #tpu.dot_dimension_numbers<[1], [0], [0], [1], [0, 0, 1, 1], [], []>} : vector<3x8xf32>, vector<8x2xf32>, vector<3x2xf32> -> vector<3x2xf32>
    %c1 = arith.constant 1 : index
    %c0_5 = arith.constant 0 : index
    %c0_6 = arith.constant 0 : index
    %5 = vector.load %arg1[%c1, %c0_5, %c0_6] : memref<2x3x8xf32, #tpu.memory_space<vmem>>, vector<1x3x8xf32>
    %6 = vector.shape_cast %5 : vector<1x3x8xf32> to vector<3x8xf32>
    %c1_7 = arith.constant 1 : index
    %c0_8 = arith.constant 0 : index
    %c0_9 = arith.constant 0 : index
    %7 = vector.load %arg0[%c1_7, %c0_8, %c0_9] : memref<2x8x2xf32, #tpu.memory_space<vmem>>, vector<1x8x2xf32>
    %8 = vector.shape_cast %7 : vector<1x8x2xf32> to vector<8x2xf32>
    %cst_10 = arith.constant dense<0.000000e+00> : vector<3x2xf32>
    %9 = tpu.matmul %6, %8, %cst_10 {dimension_numbers = #tpu.dot_dimension_numbers<[1], [0], [0], [1], [0, 0, 1, 1], [], []>} : vector<3x8xf32>, vector<8x2xf32>, vector<3x2xf32> -> vector<3x2xf32>
    %10 = arith.addf %4, %9 : vector<3x2xf32>
    %c0_11 = arith.constant 0 : index
    %c0_12 = arith.constant 0 : index
    %11 = vector.load %arg2[%c0_11, %c0_12] : memref<3x1xf32, #tpu.memory_space<vmem>>, vector<3x1xf32>
    %12 = vector.broadcast %11 : vector<3x1xf32> to vector<3x2xf32>
    %13 = arith.addf %10, %12 : vector<3x2xf32>
    %c0_13 = arith.constant 0 : index
    %c0_14 = arith.constant 0 : index
    %14 = vector.load %arg3[%c0_13, %c0_14] : memref<3x2xf32, #tpu.memory_space<vmem>>, vector<3x2xf32>
    tpu.vector_store %arg3[%c0_13, %c0_14], %13 {strides = array<i32>} : memref<3x2xf32, #tpu.memory_space<vmem>>, vector<3x2xf32>,
    return
  }
}

module attributes {stable_mosaic.version = 11 : i64} {
  func.func @_stream_kernel(%arg0: i32, %arg1: memref<1x32x128xf32, #tpu.memory_space<vmem>>, %arg2: memref<1x8x32xf32, #tpu.memory_space<vmem>>, %arg3: memref<1x8x1xf32, #tpu.memory_space<vmem>>, %arg4: memref<1x3x8x72xf32, #tpu.memory_space<vmem>>, %arg5: memref<1x3x8x1xf32, #tpu.memory_space<vmem>>, %arg6: memref<1x8x8xf32, #tpu.memory_space<vmem>>, %arg7: memref<1x8x1xf32, #tpu.memory_space<vmem>>, %arg8: memref<9x128xf32, #tpu.memory_space<vmem>>, %arg9: memref<9x128xf32, #tpu.memory_space<vmem>>, %arg10: memref<128x128xf32, #tpu.memory_space<vmem>>, %arg11: memref<128x2xf32, #tpu.memory_space<vmem>>, %arg12: memref<1x8x2xf32, #tpu.memory_space<vmem>>) attributes {dimension_semantics = [#tpu.dimension_semantics<parallel>], iteration_bounds = array<i64: 2>, scalar_prefetch = 0 : i64, scratch_operands = 0 : i64, tpu.core_type = #tpu.core_type<tc>, window_params = [{transform_indices = @transform_0, window_bounds = array<i64: 1, 32, 128>}, {transform_indices = @transform_1, window_bounds = array<i64: 1, 8, 32>}, {transform_indices = @transform_2, window_bounds = array<i64: 1, 8, 1>}, {transform_indices = @transform_3, window_bounds = array<i64: 1, 3, 8, 72>}, {transform_indices = @transform_4, window_bounds = array<i64: 1, 3, 8, 1>}, {transform_indices = @transform_5, window_bounds = array<i64: 1, 8, 8>}, {transform_indices = @transform_6, window_bounds = array<i64: 1, 8, 1>}, {pipeline_mode = #tpu.pipeline_mode<synchronous>, transform_indices = @transform_7, window_bounds = array<i64: 9, 128>}, {pipeline_mode = #tpu.pipeline_mode<synchronous>, transform_indices = @transform_8, window_bounds = array<i64: 9, 128>}, {pipeline_mode = #tpu.pipeline_mode<synchronous>, transform_indices = @transform_9, window_bounds = array<i64: 128, 128>}, {pipeline_mode = #tpu.pipeline_mode<synchronous>, transform_indices = @transform_10, window_bounds = array<i64: 128, 2>}, {transform_indices = @transform_11, window_bounds = array<i64: 1, 8, 2>}]} {
    %c0 = arith.constant 0 : index
    %c0_0 = arith.constant 0 : index
    %0 = vector.load %arg8[%c0, %c0_0] : memref<9x128xf32, #tpu.memory_space<vmem>>, vector<9x128xf32>
    %c0_1 = arith.constant 0 : index
    %c0_2 = arith.constant 0 : index
    %1 = vector.load %arg9[%c0_1, %c0_2] : memref<9x128xf32, #tpu.memory_space<vmem>>, vector<9x128xf32>
    %c0_3 = arith.constant 0 : index
    %c0_4 = arith.constant 0 : index
    %c0_5 = arith.constant 0 : index
    %2 = vector.load %arg2[%c0_3, %c0_4, %c0_5] : memref<1x8x32xf32, #tpu.memory_space<vmem>>, vector<1x8x32xf32>
    %3 = vector.shape_cast %2 : vector<1x8x32xf32> to vector<8x32xf32>
    %c0_6 = arith.constant 0 : index
    %c0_7 = arith.constant 0 : index
    %c0_8 = arith.constant 0 : index
    %4 = vector.load %arg1[%c0_6, %c0_7, %c0_8] : memref<1x32x128xf32, #tpu.memory_space<vmem>>, vector<1x32x128xf32>
    %5 = vector.shape_cast %4 : vector<1x32x128xf32> to vector<32x128xf32>
    %cst = arith.constant dense<0.000000e+00> : vector<8x128xf32>
    %6 = tpu.matmul %3, %5, %cst {dimension_numbers = #tpu.dot_dimension_numbers<[1], [0], [0], [1], [0, 0, 1, 1], [], []>} : vector<8x32xf32>, vector<32x128xf32>, vector<8x128xf32> -> vector<8x128xf32>
    %c0_9 = arith.constant 0 : index
    %c0_10 = arith.constant 0 : index
    %c0_11 = arith.constant 0 : index
    %7 = vector.load %arg3[%c0_9, %c0_10, %c0_11] : memref<1x8x1xf32, #tpu.memory_space<vmem>>, vector<1x8x1xf32>
    %8 = vector.shape_cast %7 : vector<1x8x1xf32> to vector<8x1xf32>
    %9 = vector.broadcast %8 : vector<8x1xf32> to vector<8x128xf32>
    %10 = arith.addf %6, %9 : vector<8x128xf32>
    %cst_12 = arith.constant 0.000000e+00 : f32
    %11 = vector.broadcast %cst_12 : f32 to vector<8x128xf32>
    %12 = arith.maximumf %10, %11 : vector<8x128xf32>
    %c0_13 = arith.constant 0 : index
    %c0_14 = arith.constant 0 : index
    %c0_15 = arith.constant 0 : index
    %c0_16 = arith.constant 0 : index
    %13 = vector.load %arg4[%c0_13, %c0_14, %c0_15, %c0_16] : memref<1x3x8x72xf32, #tpu.memory_space<vmem>>, vector<1x1x8x72xf32>
    %14 = vector.shape_cast %13 : vector<1x1x8x72xf32> to vector<8x72xf32>
    %c0_17 = arith.constant 0 : index
    %c0_18 = arith.constant 0 : index
    %c0_19 = arith.constant 0 : index
    %c0_20 = arith.constant 0 : index
    %15 = vector.load %arg5[%c0_17, %c0_18, %c0_19, %c0_20] : memref<1x3x8x1xf32, #tpu.memory_space<vmem>>, vector<1x1x8x1xf32>
    %16 = vector.shape_cast %15 : vector<1x1x8x1xf32> to vector<8x1xf32>
    %c9_i32 = arith.constant 9 : i32
    %17 = tpu.dynamic_rotate %12 by %c9_i32 dim 1 : vector<8x128xf32>, i32 -> vector<8x128xf32>
    %18 = vector.extract_strided_slice %0 {offsets = [0, 0], sizes = [1, 128], strides = [1, 1]} : vector<9x128xf32> to vector<1x128xf32>
    %19 = vector.broadcast %18 : vector<1x128xf32> to vector<8x128xf32>
    %20 = arith.mulf %17, %19 : vector<8x128xf32>
    %c8_i32 = arith.constant 8 : i32
    %21 = tpu.dynamic_rotate %12 by %c8_i32 dim 1 : vector<8x128xf32>, i32 -> vector<8x128xf32>
    %22 = vector.extract_strided_slice %0 {offsets = [1, 0], sizes = [1, 128], strides = [1, 1]} : vector<9x128xf32> to vector<1x128xf32>
    %23 = vector.broadcast %22 : vector<1x128xf32> to vector<8x128xf32>
    %24 = arith.mulf %21, %23 : vector<8x128xf32>
    %c7_i32 = arith.constant 7 : i32
    %25 = tpu.dynamic_rotate %12 by %c7_i32 dim 1 : vector<8x128xf32>, i32 -> vector<8x128xf32>
    %26 = vector.extract_strided_slice %0 {offsets = [2, 0], sizes = [1, 128], strides = [1, 1]} : vector<9x128xf32> to vector<1x128xf32>
    %27 = vector.broadcast %26 : vector<1x128xf32> to vector<8x128xf32>
    %28 = arith.mulf %25, %27 : vector<8x128xf32>
    %c1_i32 = arith.constant 1 : i32
    %29 = tpu.dynamic_rotate %12 by %c1_i32 dim 1 : vector<8x128xf32>, i32 -> vector<8x128xf32>
    %30 = vector.extract_strided_slice %0 {offsets = [3, 0], sizes = [1, 128], strides = [1, 1]} : vector<9x128xf32> to vector<1x128xf32>
    %31 = vector.broadcast %30 : vector<1x128xf32> to vector<8x128xf32>
    %32 = arith.mulf %29, %31 : vector<8x128xf32>
    %33 = vector.extract_strided_slice %0 {offsets = [4, 0], sizes = [1, 128], strides = [1, 1]} : vector<9x128xf32> to vector<1x128xf32>
    %34 = vector.broadcast %33 : vector<1x128xf32> to vector<8x128xf32>
    %35 = arith.mulf %12, %34 : vector<8x128xf32>
    %c127_i32 = arith.constant 127 : i32
    %36 = tpu.dynamic_rotate %12 by %c127_i32 dim 1 : vector<8x128xf32>, i32 -> vector<8x128xf32>
    %37 = vector.extract_strided_slice %0 {offsets = [5, 0], sizes = [1, 128], strides = [1, 1]} : vector<9x128xf32> to vector<1x128xf32>
    %38 = vector.broadcast %37 : vector<1x128xf32> to vector<8x128xf32>
    %39 = arith.mulf %36, %38 : vector<8x128xf32>
    %c121_i32 = arith.constant 121 : i32
    %40 = tpu.dynamic_rotate %12 by %c121_i32 dim 1 : vector<8x128xf32>, i32 -> vector<8x128xf32>
    %41 = vector.extract_strided_slice %0 {offsets = [6, 0], sizes = [1, 128], strides = [1, 1]} : vector<9x128xf32> to vector<1x128xf32>
    %42 = vector.broadcast %41 : vector<1x128xf32> to vector<8x128xf32>
    %43 = arith.mulf %40, %42 : vector<8x128xf32>
    %c120_i32 = arith.constant 120 : i32
    %44 = tpu.dynamic_rotate %12 by %c120_i32 dim 1 : vector<8x128xf32>, i32 -> vector<8x128xf32>
    %45 = vector.extract_strided_slice %0 {offsets = [7, 0], sizes = [1, 128], strides = [1, 1]} : vector<9x128xf32> to vector<1x128xf32>
    %46 = vector.broadcast %45 : vector<1x128xf32> to vector<8x128xf32>
    %47 = arith.mulf %44, %46 : vector<8x128xf32>
    %c119_i32 = arith.constant 119 : i32
    %48 = tpu.dynamic_rotate %12 by %c119_i32 dim 1 : vector<8x128xf32>, i32 -> vector<8x128xf32>
    %49 = vector.extract_strided_slice %0 {offsets = [8, 0], sizes = [1, 128], strides = [1, 1]} : vector<9x128xf32> to vector<1x128xf32>
    %50 = vector.broadcast %49 : vector<1x128xf32> to vector<8x128xf32>
    %51 = arith.mulf %48, %50 : vector<8x128xf32>
    %52 = tpu.concatenate %20, %24, %28, %32, %35, %39, %43, %47, %51 in 0 : vector<8x128xf32>, vector<8x128xf32>, vector<8x128xf32>, vector<8x128xf32>, vector<8x128xf32>, vector<8x128xf32>, vector<8x128xf32>, vector<8x128xf32>, vector<8x128xf32> -> vector<72x128xf32>
    %cst_21 = arith.constant dense<0.000000e+00> : vector<8x128xf32>
    %53 = tpu.matmul %14, %52, %cst_21 {dimension_numbers = #tpu.dot_dimension_numbers<[1], [0], [0], [1], [0, 0, 1, 1], [], []>} : vector<8x72xf32>, vector<72x128xf32>, vector<8x128xf32> -> vector<8x128xf32>
    %54 = vector.broadcast %16 : vector<8x1xf32> to vector<8x128xf32>
    %55 = arith.addf %53, %54 : vector<8x128xf32>
    %cst_22 = arith.constant 0.000000e+00 : f32
    %56 = vector.broadcast %cst_22 : f32 to vector<8x128xf32>
    %57 = arith.maximumf %55, %56 : vector<8x128xf32>
    %c0_23 = arith.constant 0 : index
    %c1 = arith.constant 1 : index
    %c0_24 = arith.constant 0 : index
    %c0_25 = arith.constant 0 : index
    %58 = vector.load %arg4[%c0_23, %c1, %c0_24, %c0_25] : memref<1x3x8x72xf32, #tpu.memory_space<vmem>>, vector<1x1x8x72xf32>
    %59 = vector.shape_cast %58 : vector<1x1x8x72xf32> to vector<8x72xf32>
    %c0_26 = arith.constant 0 : index
    %c1_27 = arith.constant 1 : index
    %c0_28 = arith.constant 0 : index
    %c0_29 = arith.constant 0 : index
    %60 = vector.load %arg5[%c0_26, %c1_27, %c0_28, %c0_29] : memref<1x3x8x1xf32, #tpu.memory_space<vmem>>, vector<1x1x8x1xf32>
    %61 = vector.shape_cast %60 : vector<1x1x8x1xf32> to vector<8x1xf32>
    %c9_i32_30 = arith.constant 9 : i32
    %62 = tpu.dynamic_rotate %57 by %c9_i32_30 dim 1 : vector<8x128xf32>, i32 -> vector<8x128xf32>
    %63 = vector.extract_strided_slice %0 {offsets = [0, 0], sizes = [1, 128], strides = [1, 1]} : vector<9x128xf32> to vector<1x128xf32>
    %64 = vector.broadcast %63 : vector<1x128xf32> to vector<8x128xf32>
    %65 = arith.mulf %62, %64 : vector<8x128xf32>
    %c8_i32_31 = arith.constant 8 : i32
    %66 = tpu.dynamic_rotate %57 by %c8_i32_31 dim 1 : vector<8x128xf32>, i32 -> vector<8x128xf32>
    %67 = vector.extract_strided_slice %0 {offsets = [1, 0], sizes = [1, 128], strides = [1, 1]} : vector<9x128xf32> to vector<1x128xf32>
    %68 = vector.broadcast %67 : vector<1x128xf32> to vector<8x128xf32>
    %69 = arith.mulf %66, %68 : vector<8x128xf32>
    %c7_i32_32 = arith.constant 7 : i32
    %70 = tpu.dynamic_rotate %57 by %c7_i32_32 dim 1 : vector<8x128xf32>, i32 -> vector<8x128xf32>
    %71 = vector.extract_strided_slice %0 {offsets = [2, 0], sizes = [1, 128], strides = [1, 1]} : vector<9x128xf32> to vector<1x128xf32>
    %72 = vector.broadcast %71 : vector<1x128xf32> to vector<8x128xf32>
    %73 = arith.mulf %70, %72 : vector<8x128xf32>
    %c1_i32_33 = arith.constant 1 : i32
    %74 = tpu.dynamic_rotate %57 by %c1_i32_33 dim 1 : vector<8x128xf32>, i32 -> vector<8x128xf32>
    %75 = vector.extract_strided_slice %0 {offsets = [3, 0], sizes = [1, 128], strides = [1, 1]} : vector<9x128xf32> to vector<1x128xf32>
    %76 = vector.broadcast %75 : vector<1x128xf32> to vector<8x128xf32>
    %77 = arith.mulf %74, %76 : vector<8x128xf32>
    %78 = vector.extract_strided_slice %0 {offsets = [4, 0], sizes = [1, 128], strides = [1, 1]} : vector<9x128xf32> to vector<1x128xf32>
    %79 = vector.broadcast %78 : vector<1x128xf32> to vector<8x128xf32>
    %80 = arith.mulf %57, %79 : vector<8x128xf32>
    %c127_i32_34 = arith.constant 127 : i32
    %81 = tpu.dynamic_rotate %57 by %c127_i32_34 dim 1 : vector<8x128xf32>, i32 -> vector<8x128xf32>
    %82 = vector.extract_strided_slice %0 {offsets = [5, 0], sizes = [1, 128], strides = [1, 1]} : vector<9x128xf32> to vector<1x128xf32>
    %83 = vector.broadcast %82 : vector<1x128xf32> to vector<8x128xf32>
    %84 = arith.mulf %81, %83 : vector<8x128xf32>
    %c121_i32_35 = arith.constant 121 : i32
    %85 = tpu.dynamic_rotate %57 by %c121_i32_35 dim 1 : vector<8x128xf32>, i32 -> vector<8x128xf32>
    %86 = vector.extract_strided_slice %0 {offsets = [6, 0], sizes = [1, 128], strides = [1, 1]} : vector<9x128xf32> to vector<1x128xf32>
    %87 = vector.broadcast %86 : vector<1x128xf32> to vector<8x128xf32>
    %88 = arith.mulf %85, %87 : vector<8x128xf32>
    %c120_i32_36 = arith.constant 120 : i32
    %89 = tpu.dynamic_rotate %57 by %c120_i32_36 dim 1 : vector<8x128xf32>, i32 -> vector<8x128xf32>
    %90 = vector.extract_strided_slice %0 {offsets = [7, 0], sizes = [1, 128], strides = [1, 1]} : vector<9x128xf32> to vector<1x128xf32>
    %91 = vector.broadcast %90 : vector<1x128xf32> to vector<8x128xf32>
    %92 = arith.mulf %89, %91 : vector<8x128xf32>
    %c119_i32_37 = arith.constant 119 : i32
    %93 = tpu.dynamic_rotate %57 by %c119_i32_37 dim 1 : vector<8x128xf32>, i32 -> vector<8x128xf32>
    %94 = vector.extract_strided_slice %0 {offsets = [8, 0], sizes = [1, 128], strides = [1, 1]} : vector<9x128xf32> to vector<1x128xf32>
    %95 = vector.broadcast %94 : vector<1x128xf32> to vector<8x128xf32>
    %96 = arith.mulf %93, %95 : vector<8x128xf32>
    %97 = tpu.concatenate %65, %69, %73, %77, %80, %84, %88, %92, %96 in 0 : vector<8x128xf32>, vector<8x128xf32>, vector<8x128xf32>, vector<8x128xf32>, vector<8x128xf32>, vector<8x128xf32>, vector<8x128xf32>, vector<8x128xf32>, vector<8x128xf32> -> vector<72x128xf32>
    %cst_38 = arith.constant dense<0.000000e+00> : vector<8x128xf32>
    %98 = tpu.matmul %59, %97, %cst_38 {dimension_numbers = #tpu.dot_dimension_numbers<[1], [0], [0], [1], [0, 0, 1, 1], [], []>} : vector<8x72xf32>, vector<72x128xf32>, vector<8x128xf32> -> vector<8x128xf32>
    %99 = vector.broadcast %61 : vector<8x1xf32> to vector<8x128xf32>
    %100 = arith.addf %98, %99 : vector<8x128xf32>
    %cst_39 = arith.constant 0.000000e+00 : f32
    %101 = vector.broadcast %cst_39 : f32 to vector<8x128xf32>
    %102 = arith.maximumf %100, %101 : vector<8x128xf32>
    %c9_i32_40 = arith.constant 9 : i32
    %103 = tpu.dynamic_rotate %102 by %c9_i32_40 dim 1 : vector<8x128xf32>, i32 -> vector<8x128xf32>
    %104 = vector.extract_strided_slice %0 {offsets = [0, 0], sizes = [1, 128], strides = [1, 1]} : vector<9x128xf32> to vector<1x128xf32>
    %105 = vector.broadcast %104 : vector<1x128xf32> to vector<8x128xf32>
    %106 = arith.mulf %103, %105 : vector<8x128xf32>
    %c8_i32_41 = arith.constant 8 : i32
    %107 = tpu.dynamic_rotate %102 by %c8_i32_41 dim 1 : vector<8x128xf32>, i32 -> vector<8x128xf32>
    %108 = vector.extract_strided_slice %0 {offsets = [1, 0], sizes = [1, 128], strides = [1, 1]} : vector<9x128xf32> to vector<1x128xf32>
    %109 = vector.broadcast %108 : vector<1x128xf32> to vector<8x128xf32>
    %110 = arith.mulf %107, %109 : vector<8x128xf32>
    %c7_i32_42 = arith.constant 7 : i32
    %111 = tpu.dynamic_rotate %102 by %c7_i32_42 dim 1 : vector<8x128xf32>, i32 -> vector<8x128xf32>
    %112 = vector.extract_strided_slice %0 {offsets = [2, 0], sizes = [1, 128], strides = [1, 1]} : vector<9x128xf32> to vector<1x128xf32>
    %113 = vector.broadcast %112 : vector<1x128xf32> to vector<8x128xf32>
    %114 = arith.mulf %111, %113 : vector<8x128xf32>
    %c1_i32_43 = arith.constant 1 : i32
    %115 = tpu.dynamic_rotate %102 by %c1_i32_43 dim 1 : vector<8x128xf32>, i32 -> vector<8x128xf32>
    %116 = vector.extract_strided_slice %0 {offsets = [3, 0], sizes = [1, 128], strides = [1, 1]} : vector<9x128xf32> to vector<1x128xf32>
    %117 = vector.broadcast %116 : vector<1x128xf32> to vector<8x128xf32>
    %118 = arith.mulf %115, %117 : vector<8x128xf32>
    %119 = vector.extract_strided_slice %0 {offsets = [4, 0], sizes = [1, 128], strides = [1, 1]} : vector<9x128xf32> to vector<1x128xf32>
    %120 = vector.broadcast %119 : vector<1x128xf32> to vector<8x128xf32>
    %121 = arith.mulf %102, %120 : vector<8x128xf32>
    %c127_i32_44 = arith.constant 127 : i32
    %122 = tpu.dynamic_rotate %102 by %c127_i32_44 dim 1 : vector<8x128xf32>, i32 -> vector<8x128xf32>
    %123 = vector.extract_strided_slice %0 {offsets = [5, 0], sizes = [1, 128], strides = [1, 1]} : vector<9x128xf32> to vector<1x128xf32>
    %124 = vector.broadcast %123 : vector<1x128xf32> to vector<8x128xf32>
    %125 = arith.mulf %122, %124 : vector<8x128xf32>
    %c121_i32_45 = arith.constant 121 : i32
    %126 = tpu.dynamic_rotate %102 by %c121_i32_45 dim 1 : vector<8x128xf32>, i32 -> vector<8x128xf32>
    %127 = vector.extract_strided_slice %0 {offsets = [6, 0], sizes = [1, 128], strides = [1, 1]} : vector<9x128xf32> to vector<1x128xf32>
    %128 = vector.broadcast %127 : vector<1x128xf32> to vector<8x128xf32>
    %129 = arith.mulf %126, %128 : vector<8x128xf32>
    %c120_i32_46 = arith.constant 120 : i32
    %130 = tpu.dynamic_rotate %102 by %c120_i32_46 dim 1 : vector<8x128xf32>, i32 -> vector<8x128xf32>
    %131 = vector.extract_strided_slice %0 {offsets = [7, 0], sizes = [1, 128], strides = [1, 1]} : vector<9x128xf32> to vector<1x128xf32>
    %132 = vector.broadcast %131 : vector<1x128xf32> to vector<8x128xf32>
    %133 = arith.mulf %130, %132 : vector<8x128xf32>
    %c119_i32_47 = arith.constant 119 : i32
    %134 = tpu.dynamic_rotate %102 by %c119_i32_47 dim 1 : vector<8x128xf32>, i32 -> vector<8x128xf32>
    %135 = vector.extract_strided_slice %0 {offsets = [8, 0], sizes = [1, 128], strides = [1, 1]} : vector<9x128xf32> to vector<1x128xf32>
    %136 = vector.broadcast %135 : vector<1x128xf32> to vector<8x128xf32>
    %137 = arith.mulf %134, %136 : vector<8x128xf32>
    %138 = arith.maximumf %106, %110 : vector<8x128xf32>
    %139 = arith.maximumf %138, %114 : vector<8x128xf32>
    %140 = arith.maximumf %139, %118 : vector<8x128xf32>
    %141 = arith.maximumf %140, %121 : vector<8x128xf32>
    %142 = arith.maximumf %141, %125 : vector<8x128xf32>
    %143 = arith.maximumf %142, %129 : vector<8x128xf32>
    %144 = arith.maximumf %143, %133 : vector<8x128xf32>
    %145 = arith.maximumf %144, %137 : vector<8x128xf32>
    %c0_48 = arith.constant 0 : index
    %c0_49 = arith.constant 0 : index
    %c0_50 = arith.constant 0 : index
    %146 = vector.load %arg6[%c0_48, %c0_49, %c0_50] : memref<1x8x8xf32, #tpu.memory_space<vmem>>, vector<1x8x8xf32>
    %147 = vector.shape_cast %146 : vector<1x8x8xf32> to vector<8x8xf32>
    %cst_51 = arith.constant dense<0.000000e+00> : vector<8x128xf32>
    %148 = tpu.matmul %147, %12, %cst_51 {dimension_numbers = #tpu.dot_dimension_numbers<[1], [0], [0], [1], [0, 0, 1, 1], [], []>} : vector<8x8xf32>, vector<8x128xf32>, vector<8x128xf32> -> vector<8x128xf32>
    %149 = arith.addf %145, %148 : vector<8x128xf32>
    %c0_52 = arith.constant 0 : index
    %c0_53 = arith.constant 0 : index
    %150 = vector.load %arg10[%c0_52, %c0_53] : memref<128x128xf32, #tpu.memory_space<vmem>>, vector<128x128xf32>
    %cst_54 = arith.constant dense<0.000000e+00> : vector<8x128xf32>
    %151 = tpu.matmul %149, %150, %cst_54 {dimension_numbers = #tpu.dot_dimension_numbers<[1], [0], [0], [1], [0, 0, 1, 1], [], []>} : vector<8x128xf32>, vector<128x128xf32>, vector<8x128xf32> -> vector<8x128xf32>
    %c0_55 = arith.constant 0 : index
    %c0_56 = arith.constant 0 : index
    %c0_57 = arith.constant 0 : index
    %152 = vector.load %arg7[%c0_55, %c0_56, %c0_57] : memref<1x8x1xf32, #tpu.memory_space<vmem>>, vector<1x8x1xf32>
    %153 = vector.shape_cast %152 : vector<1x8x1xf32> to vector<8x1xf32>
    %154 = vector.broadcast %153 : vector<8x1xf32> to vector<8x128xf32>
    %155 = arith.addf %151, %154 : vector<8x128xf32>
    %c0_58 = arith.constant 0 : index
    %c2 = arith.constant 2 : index
    %c0_59 = arith.constant 0 : index
    %c0_60 = arith.constant 0 : index
    %156 = vector.load %arg4[%c0_58, %c2, %c0_59, %c0_60] : memref<1x3x8x72xf32, #tpu.memory_space<vmem>>, vector<1x1x8x72xf32>
    %157 = vector.shape_cast %156 : vector<1x1x8x72xf32> to vector<8x72xf32>
    %c0_61 = arith.constant 0 : index
    %c2_62 = arith.constant 2 : index
    %c0_63 = arith.constant 0 : index
    %c0_64 = arith.constant 0 : index
    %158 = vector.load %arg5[%c0_61, %c2_62, %c0_63, %c0_64] : memref<1x3x8x1xf32, #tpu.memory_space<vmem>>, vector<1x1x8x1xf32>
    %159 = vector.shape_cast %158 : vector<1x1x8x1xf32> to vector<8x1xf32>
    %c5_i32 = arith.constant 5 : i32
    %160 = tpu.dynamic_rotate %155 by %c5_i32 dim 1 : vector<8x128xf32>, i32 -> vector<8x128xf32>
    %161 = vector.extract_strided_slice %1 {offsets = [0, 0], sizes = [1, 128], strides = [1, 1]} : vector<9x128xf32> to vector<1x128xf32>
    %162 = vector.broadcast %161 : vector<1x128xf32> to vector<8x128xf32>
    %163 = arith.mulf %160, %162 : vector<8x128xf32>
    %c4_i32 = arith.constant 4 : i32
    %164 = tpu.dynamic_rotate %155 by %c4_i32 dim 1 : vector<8x128xf32>, i32 -> vector<8x128xf32>
    %165 = vector.extract_strided_slice %1 {offsets = [1, 0], sizes = [1, 128], strides = [1, 1]} : vector<9x128xf32> to vector<1x128xf32>
    %166 = vector.broadcast %165 : vector<1x128xf32> to vector<8x128xf32>
    %167 = arith.mulf %164, %166 : vector<8x128xf32>
    %c3_i32 = arith.constant 3 : i32
    %168 = tpu.dynamic_rotate %155 by %c3_i32 dim 1 : vector<8x128xf32>, i32 -> vector<8x128xf32>
    %169 = vector.extract_strided_slice %1 {offsets = [2, 0], sizes = [1, 128], strides = [1, 1]} : vector<9x128xf32> to vector<1x128xf32>
    %170 = vector.broadcast %169 : vector<1x128xf32> to vector<8x128xf32>
    %171 = arith.mulf %168, %170 : vector<8x128xf32>
    %c1_i32_65 = arith.constant 1 : i32
    %172 = tpu.dynamic_rotate %155 by %c1_i32_65 dim 1 : vector<8x128xf32>, i32 -> vector<8x128xf32>
    %173 = vector.extract_strided_slice %1 {offsets = [3, 0], sizes = [1, 128], strides = [1, 1]} : vector<9x128xf32> to vector<1x128xf32>
    %174 = vector.broadcast %173 : vector<1x128xf32> to vector<8x128xf32>
    %175 = arith.mulf %172, %174 : vector<8x128xf32>
    %176 = vector.extract_strided_slice %1 {offsets = [4, 0], sizes = [1, 128], strides = [1, 1]} : vector<9x128xf32> to vector<1x128xf32>
    %177 = vector.broadcast %176 : vector<1x128xf32> to vector<8x128xf32>
    %178 = arith.mulf %155, %177 : vector<8x128xf32>
    %c127_i32_66 = arith.constant 127 : i32
    %179 = tpu.dynamic_rotate %155 by %c127_i32_66 dim 1 : vector<8x128xf32>, i32 -> vector<8x128xf32>
    %180 = vector.extract_strided_slice %1 {offsets = [5, 0], sizes = [1, 128], strides = [1, 1]} : vector<9x128xf32> to vector<1x128xf32>
    %181 = vector.broadcast %180 : vector<1x128xf32> to vector<8x128xf32>
    %182 = arith.mulf %179, %181 : vector<8x128xf32>
    %c125_i32 = arith.constant 125 : i32
    %183 = tpu.dynamic_rotate %155 by %c125_i32 dim 1 : vector<8x128xf32>, i32 -> vector<8x128xf32>
    %184 = vector.extract_strided_slice %1 {offsets = [6, 0], sizes = [1, 128], strides = [1, 1]} : vector<9x128xf32> to vector<1x128xf32>
    %185 = vector.broadcast %184 : vector<1x128xf32> to vector<8x128xf32>
    %186 = arith.mulf %183, %185 : vector<8x128xf32>
    %c124_i32 = arith.constant 124 : i32
    %187 = tpu.dynamic_rotate %155 by %c124_i32 dim 1 : vector<8x128xf32>, i32 -> vector<8x128xf32>
    %188 = vector.extract_strided_slice %1 {offsets = [7, 0], sizes = [1, 128], strides = [1, 1]} : vector<9x128xf32> to vector<1x128xf32>
    %189 = vector.broadcast %188 : vector<1x128xf32> to vector<8x128xf32>
    %190 = arith.mulf %187, %189 : vector<8x128xf32>
    %c123_i32 = arith.constant 123 : i32
    %191 = tpu.dynamic_rotate %155 by %c123_i32 dim 1 : vector<8x128xf32>, i32 -> vector<8x128xf32>
    %192 = vector.extract_strided_slice %1 {offsets = [8, 0], sizes = [1, 128], strides = [1, 1]} : vector<9x128xf32> to vector<1x128xf32>
    %193 = vector.broadcast %192 : vector<1x128xf32> to vector<8x128xf32>
    %194 = arith.mulf %191, %193 : vector<8x128xf32>
    %195 = tpu.concatenate %163, %167, %171, %175, %178, %182, %186, %190, %194 in 0 : vector<8x128xf32>, vector<8x128xf32>, vector<8x128xf32>, vector<8x128xf32>, vector<8x128xf32>, vector<8x128xf32>, vector<8x128xf32>, vector<8x128xf32>, vector<8x128xf32> -> vector<72x128xf32>
    %cst_67 = arith.constant dense<0.000000e+00> : vector<8x128xf32>
    %196 = tpu.matmul %157, %195, %cst_67 {dimension_numbers = #tpu.dot_dimension_numbers<[1], [0], [0], [1], [0, 0, 1, 1], [], []>} : vector<8x72xf32>, vector<72x128xf32>, vector<8x128xf32> -> vector<8x128xf32>
    %197 = vector.broadcast %159 : vector<8x1xf32> to vector<8x128xf32>
    %198 = arith.addf %196, %197 : vector<8x128xf32>
    %cst_68 = arith.constant 0.000000e+00 : f32
    %199 = vector.broadcast %cst_68 : f32 to vector<8x128xf32>
    %200 = arith.maximumf %198, %199 : vector<8x128xf32>
    %c0_69 = arith.constant 0 : index
    %c0_70 = arith.constant 0 : index
    %201 = vector.load %arg11[%c0_69, %c0_70] : memref<128x2xf32, #tpu.memory_space<vmem>>, vector<128x2xf32>
    %cst_71 = arith.constant dense<0.000000e+00> : vector<8x2xf32>
    %202 = tpu.matmul %200, %201, %cst_71 {dimension_numbers = #tpu.dot_dimension_numbers<[1], [0], [0], [1], [0, 0, 1, 1], [], []>} : vector<8x128xf32>, vector<128x2xf32>, vector<8x2xf32> -> vector<8x2xf32>
    %c0_72 = arith.constant 0 : index
    %c0_73 = arith.constant 0 : index
    %c0_74 = arith.constant 0 : index
    %203 = vector.load %arg12[%c0_72, %c0_73, %c0_74] : memref<1x8x2xf32, #tpu.memory_space<vmem>>, vector<1x8x2xf32>
    %204 = vector.shape_cast %203 : vector<1x8x2xf32> to vector<8x2xf32>
    %205 = vector.shape_cast %202 : vector<8x2xf32> to vector<1x8x2xf32>
    tpu.vector_store %arg12[%c0_72, %c0_73, %c0_74], %205 {strides = array<i32>} : memref<1x8x2xf32, #tpu.memory_space<vmem>>, vector<1x8x2xf32>,
    return
  }
  func.func @transform_0(%arg0: i32) -> (i32, i32, i32) {
    %c0_i32 = arith.constant 0 : i32
    %c0_i32_0 = arith.constant 0 : i32
    %c0_i32_1 = arith.constant 0 : i32
    return %arg0, %c0_i32, %c0_i32_0 : i32, i32, i32
  }
  func.func @transform_1(%arg0: i32) -> (i32, i32, i32) {
    %c0_i32 = arith.constant 0 : i32
    %c0_i32_0 = arith.constant 0 : i32
    %c0_i32_1 = arith.constant 0 : i32
    return %arg0, %c0_i32, %c0_i32_0 : i32, i32, i32
  }
  func.func @transform_2(%arg0: i32) -> (i32, i32, i32) {
    %c0_i32 = arith.constant 0 : i32
    %c0_i32_0 = arith.constant 0 : i32
    %c0_i32_1 = arith.constant 0 : i32
    return %arg0, %c0_i32, %c0_i32_0 : i32, i32, i32
  }
  func.func @transform_3(%arg0: i32) -> (i32, i32, i32, i32) {
    %c0_i32 = arith.constant 0 : i32
    %c0_i32_0 = arith.constant 0 : i32
    %c0_i32_1 = arith.constant 0 : i32
    %c0_i32_2 = arith.constant 0 : i32
    return %arg0, %c0_i32, %c0_i32_0, %c0_i32_1 : i32, i32, i32, i32
  }
  func.func @transform_4(%arg0: i32) -> (i32, i32, i32, i32) {
    %c0_i32 = arith.constant 0 : i32
    %c0_i32_0 = arith.constant 0 : i32
    %c0_i32_1 = arith.constant 0 : i32
    %c0_i32_2 = arith.constant 0 : i32
    return %arg0, %c0_i32, %c0_i32_0, %c0_i32_1 : i32, i32, i32, i32
  }
  func.func @transform_5(%arg0: i32) -> (i32, i32, i32) {
    %c0_i32 = arith.constant 0 : i32
    %c0_i32_0 = arith.constant 0 : i32
    %c0_i32_1 = arith.constant 0 : i32
    return %arg0, %c0_i32, %c0_i32_0 : i32, i32, i32
  }
  func.func @transform_6(%arg0: i32) -> (i32, i32, i32) {
    %c0_i32 = arith.constant 0 : i32
    %c0_i32_0 = arith.constant 0 : i32
    %c0_i32_1 = arith.constant 0 : i32
    return %arg0, %c0_i32, %c0_i32_0 : i32, i32, i32
  }
  func.func @transform_7(%arg0: i32) -> (i32, i32) {
    %c0_i32 = arith.constant 0 : i32
    %c0_i32_0 = arith.constant 0 : i32
    %c0_i32_1 = arith.constant 0 : i32
    return %c0_i32, %c0_i32_0 : i32, i32
  }
  func.func @transform_8(%arg0: i32) -> (i32, i32) {
    %c0_i32 = arith.constant 0 : i32
    %c0_i32_0 = arith.constant 0 : i32
    %c0_i32_1 = arith.constant 0 : i32
    return %c0_i32, %c0_i32_0 : i32, i32
  }
  func.func @transform_9(%arg0: i32) -> (i32, i32) {
    %c0_i32 = arith.constant 0 : i32
    %c0_i32_0 = arith.constant 0 : i32
    %c0_i32_1 = arith.constant 0 : i32
    return %c0_i32, %c0_i32_0 : i32, i32
  }
  func.func @transform_10(%arg0: i32) -> (i32, i32) {
    %c0_i32 = arith.constant 0 : i32
    %c0_i32_0 = arith.constant 0 : i32
    %c0_i32_1 = arith.constant 0 : i32
    return %c0_i32, %c0_i32_0 : i32, i32
  }
  func.func @transform_11(%arg0: i32) -> (i32, i32, i32) {
    %c0_i32 = arith.constant 0 : i32
    %c0_i32_0 = arith.constant 0 : i32
    %c0_i32_1 = arith.constant 0 : i32
    return %arg0, %c0_i32, %c0_i32_0 : i32, i32, i32
  }
}

</mosaic_0001>

<bundles_post_ra>
// kernel: _lambda_.3
= control target key start
LH: loop header
LB: loop body
LE: loop exit
PB: predicated region body
PF: predicated region fallthrough
CT: control target
= control target key end

     0   :  { %v202_v0 = vmov 0.0   ;;  %vm20_vm0 = vcmask 64512   ;;  %vm203_vm1 = vmmov 0   ;;  %v204_v6 = vmov 0   ;;  %s243_s0 = inlined_call_operand.vmem [shape: f32[2,8,2], index: 0, kind: input, shape index: {}]   ;;  %s244_s1 = inlined_call_operand.vmem [shape: f32[2,3,8], index: 1, kind: input, shape index: {}]   ;;  %s245_s2 = inlined_call_operand.vmem [shape: f32[3,1], index: 2, kind: input, shape index: {}]   ;;  %s246_s3 = inlined_call_operand.vmem [shape: f32[3,2], index: 3, kind: output, shape index: {}]  }
   0x1   :  { %188 = vmatprep.subr.mxu0 %v202_v0  ;;  %193 = vmatprep.subr.mxu1 %v202_v0  ;;  %v181_v1 = vld [vmem:[%s243_s0 + $0x8] sm:$0xff]  ;;  %v15_v2 = vld [vmem:[%s243_s0] sm:$0xff]  ;;  %vm174_vm2 = vcmask 10240  }
   0x2   :  { %v180_v3 = vld [vmem:[%s244_s1 + $0x4] sm:$0x7]  ;;  %189 = vmatpush3.msra.mxu0 %v181_v1  ;;  %190 = vmatprep.mubr.msk.f32.mxu0 %vm203_vm1, %v202_v0  ;;  %v14_v4 = vld [vmem:[%s244_s1] sm:$0x7] }
   0x3   :  { %194 = vmatpush3.msra.mxu1 %v15_v2  ;;  %195 = vmatprep.mubr.msk.f32.mxu1 %vm203_vm1, %v202_v0  ;;  %v167_v5 = vld [vmem:[%s245_s2] sm:$0x7] }
   0x4   :  { %191 = vmatmul.mubr.msk.f32.vlgmr.msra.gmra.mrb[0].mxu0 %vm20_vm0, %v180_v3  ;;  %196 = vmatmul.mubr.msk.f32.vlgmr.msra.gmra.mrb[0].mxu1 %vm20_vm0, %v14_v4 }
   0x5   :  { %201 = vset.pattern.permute.xlu0 %v204_v6 }
   0x6   :  { %170 = vperm.xlu0 %201, %v167_v5  }
  0x85   :  { %v171_v7 = vpop.permute.xlu0 %170 }
  0xd7   :  { %v90_v8 = vpop.f32.mrb[0].mxu0  ;;  %v163_v9 = vpop.f32.mrb[0].mxu1 }
  0xd8   :  { %v164_v10 = vadd.f32 %v163_v9, %v90_v8  ;;  %v192_v11 = vpop.f32.mrb[1].mxu0  ;;  %v197_v12 = vpop.f32.mrb[1].mxu1 }
  0xda   :  { %v173_v13 = vadd.f32 %v171_v7, %v164_v10 }
  0xdc   :  { %175 = vst.msk [vmem:[%s246_s3] sm:$0x7] %vm174_vm2, %v173_v13 }

// kernel: _lambda_.2
= control target key start
LH: loop header
LB: loop body
LE: loop exit
PB: predicated region body
PF: predicated region fallthrough
CT: control target
= control target key end

     0   :  { %s1845_s17 = smov 0   ;;  %s2190_s0 = inlined_call_operand.vmem [shape: f32[2,32,128], index: 0, kind: input, shape index: {}]   ;;  %s2191_s1 = inlined_call_operand.vmem [shape: f32[2,8,32], index: 1, kind: input, shape index: {}]   ;;  %s2192_s2 = inlined_call_operand.vmem [shape: f32[2,8,1], index: 2, kind: input, shape index: {}]   ;;  %s2193_s3 = inlined_call_operand.vmem [shape: f32[2,3,8,72], index: 3, kind: input, shape index: {}]   ;;  %s2194_s4 = inlined_call_operand.vmem [shape: f32[2,3,8,1], index: 4, kind: input, shape index: {}]   ;;  %s2195_s5 = inlined_call_operand.vmem [shape: f32[2,8,8], index: 5, kind: input, shape index: {}]   ;;  %s2196_s6 = inlined_call_operand.vmem [shape: f32[2,8,1], index: 6, kind: input, shape index: {}]   ;;  %s2197_s7 = inlined_call_operand.vmem [shape: f32[9,128], index: 7, kind: input, shape index: {}]   ;;  %s2198_s8 = inlined_call_operand.vmem [shape: f32[9,128], index: 8, kind: input, shape index: {}]   ;;  %s2199_s9 = inlined_call_operand.vmem [shape: f32[128,128], index: 9, kind: input, shape index: {}]   ;;  %s2200_s10 = inlined_call_operand.vmem [shape: f32[128,2], index: 10, kind: input, shape index: {}]   ;;  %s2201_s11 = inlined_call_operand.vmem [shape: f32[2,8,2], index: 11, kind: output, shape index: {}]  }
   0x1 LB: > { %s1392_s18 = sadd.s32 4294967295, %s1765_s17   ;;  %p1396_p0 = scmp.ge.s32.totalorder %s1765_s17, 1  ;;  %s1765_s17 = sphi %s1845_s17, %s21_s17  }
   0x2   : > { %p393_p1 = scmp.lt.s32.totalorder %s1765_s17, 3 }
   0x4   : > { %p394_p2 = pnand %p1396_p0, %p393_p1 }
   0x5   : > { %p458_p3 = scmp.lt.s32.totalorder (!%p394_p2), %s1392_s18, 1  ;;  %v1767_v0 = vmov (!%p394_p2), 0.0|0.0   ;;  %vm1768_vm0 = vmmov (!%p394_p2), 0   ;;  %v1769_v1 = vmov (!%p394_p2), 0.0   ;;  %v1770_v2 = vmov (!%p394_p2), 0   ;;  %s1771_s30 = smov (!%p394_p2), 8  }
   0x6   : > { %397 = sbr.rel (%p394_p2) target bundleno = 1862 (0x746), region = 64  ;;  %1640 = vmatprep.subr.bf16.mxu1 (!%p394_p2), %v1767_v0  ;;  %1499 = vmatprep.mubr.msk.f32.mxu1 (!%p394_p2), %vm1768_vm0, %v1769_v1  ;;  %vm508_vm1 = vcmask (!%p394_p2), 261120   ;;  %s1772_s12 = smov (!%p394_p2), 9   ;;  %v587_v17 = vlaneseq (!%p394_p2)  ;;  %v493_v21 = vld [vmem:[%s2197_s7] sm:$0xff] (!%p394_p2)  ;;  %v1967_v55 = vld [vmem:[%s2197_s7 + $0x8] ss:$0 sm:$0xff] (!%p394_p2) }
   0x7   : > { %1757 = vset.pattern.permute.xlu0 (!%p394_p2), %v1770_v2  ;;  %1758 = vset.pattern.permute.xlu1 (!%p394_p2), %v1770_v2  ;;  %s1773_s13 = smov (!%p394_p2), 7   ;;  %s1774_s14 = smov (!%p394_p2), 1   ;;  %vm651_vm2 = vcmask (!%p394_p2), 588800   ;;  %vm868_vm3 = vcmask (!%p394_p2), 64512   ;;  %vm1265_vm4 = vcmask (!%p394_p2), 15360  }
   0x8   : > { %1658 = vmatprep.subr.bf16.mxu0 (!%p394_p2), %v1767_v0  ;;  %1541 = vmatprep.mubr.msk.f32.mxu0 (!%p394_p2), %vm1768_vm0, %v1769_v1  ;;  %s1775_s15 = smov (!%p394_p2), 127   ;;  %s1776_s16 = smov (!%p394_p2), 121   ;;  %v1907_v18 = vshrl.u32 (!%p394_p2), %v587_v17, 7 }
   0x9   : > { %s2202_s24 = smov (!%p394_p2), 120   ;;  %s2203_s25 = smov (!%p394_p2), 119  }
   0xa   : > { %v596_v19 = vsub.s32 (!%p394_p2), 1, %v1907_v18  ;;  %v589_v20 = vsub.s32 (!%p394_p2), 0, %v1907_v18  ;;  %v603_v22 = vsub.s32 (!%p394_p2), 2, %v1907_v18  ;;  %v610_v25 = vsub.s32 (!%p394_p2), 3, %v1907_v18  ;;  %s1782_s28 = smov (!%p394_p2), 125   ;;  %s1784_s20 = smov (!%p394_p2), 124  }
   0xb   : > { %v615_v29 = vsub.s32 (!%p394_p2), 4, %v1907_v18  ;;  %v622_v33 = vsub.s32 (!%p394_p2), 5, %v1907_v18  ;;  %v629_v38 = vsub.s32 (!%p394_p2), 6, %v1907_v18  ;;  %v636_v42 = vsub.s32 (!%p394_p2), 7, %v1907_v18  ;;  %v1179_v18 = vld [vmem:[%s2200_s10] sm:$0xff] (!%p394_p2) }
   0xc   : > { %v1917_v23 = vrot.slane (!%p394_p2), %v493_v21, %v596_v19  ;;  %v1921_v24 = vrot.slane (!%p394_p2), %v493_v21, %v589_v20  ;;  %v1926_v28 = vrot.slane (!%p394_p2), %v493_v21, %v603_v22  ;;  %v1933_v32 = vrot.slane (!%p394_p2), %v493_v21, %v610_v25 }
   0xd   : > { %s2207_s18 = smov (!%p458_p3, %s1392_s18), 1  ;;  %v1938_v37 = vrot.slane %v493_v21, %v615_v29  ;;  %v1945_v41 = vrot.slane %v493_v21, %v622_v33  ;;  %v1954_v47 = vrot.slane %v493_v21, %v629_v38  ;;  %v1958_v48 = vrot.slane %v493_v21, %v636_v42 }
   0xe   : > { %s1419_s19 = sshll.u32 %s2207_s18, 5  ;;  %s1866_s23 = sshll.u32 %s2207_s18, 3 }
   0xf   : > { %s462_s22 = scalar_lea.vmem %s2190_s0, %s1419_s19  ;;  %s470_s26 = scalar_lea.vmem %s2192_s2, %s1866_s23 }
  0x10   : > { %v498_v3 = vld [vmem:[%s462_s22] sm:$0xff]  ;;  %v499_v4 = vld [vmem:[%s462_s22 + $0x8] sm:$0xff]  ;;  %v500_v5 = vld [vmem:[%s462_s22 + $0x10] sm:$0xff]  ;;  %s466_s29 = scalar_lea.vmem %s2191_s1, %s1866_s23  ;;  %s1730_s19 = smul.u32 24, %s2207_s18 }
  0x11   : > { %v1641_v6 = vpack.c.bf16 %v499_v4, %v498_v3  ;;  %v501_v7 = vld [vmem:[%s462_s22 + $0x18] sm:$0xff]  ;;  %v502_v8 = vld [vmem:[%s470_s26] sm:$0xff]  ;;  %s484_s27 = scalar_lea.vmem %s2195_s5, %s1866_s23  ;;  %s488_s18 = scalar_lea.vmem %s2196_s6, %s1866_s23 }
  0x12   : > { %505 = vperm.xlu0 %1757, %v502_v8   ;;  %v1644_v9 = vpack.c.bf16 %v501_v7, %v500_v5  ;;  %v497_v10 = vld [vmem:[%s466_s29] sm:$0xff]  ;;  %s1900_s22 = scalar_lea.vmem %s2194_s4, %s1730_s19  ;;  %s1974_s26 = scalar_lea.vmem %s2193_s3, %s1730_s19 }
  0x13   : > { %1642 = vmatpush3.bf16.msra.mxu1 %v1641_v6  ;;  %v584_v16 = vld [vmem:[%s1900_s22] sm:$0xff]  ;;  %v1410_v2 = vld [vmem:[%s1900_s22 + $0x8] sm:$0xff]  ;;  %s2204_s19 = smov 119   ;;  %s1783_s29 = smov 123  }
  0x14   : > { %1643 = vmatprep.subr.bf16.mxu1 %v1767_v0  ;;  %v583_v58 = vld [vmem:[%s1974_s26] sm:$0xff] }
  0x15   : > { %v867_v3 = vld [vmem:[%s484_s27] sm:$0xff]  ;;  %s1781_s27 = smov 3  }
  0x17   : > { %1645 = vmatpush3.bf16.msra.mxu1 %v1644_v9 }
  0x18   : > { %1646 = vmatprep.subr.bf16.mxu1 %v1767_v0 }
  0x1a   : > { %1500 = vmatmul.mubr.msk.f32.vlgmr.msra.gmra.mrb[0].mxu1 %vm508_vm1, %v497_v10 }
  0x1b   : > { %1520 = vmatprep.mubr.msk.f32.mxu1 %vm1768_vm0, %v1769_v1 }
  0x91   : > { %v506_v11 = vpop.permute.xlu0 %505 }
  0xed   : > { %v578_v12 = vpop.f32.mrb[0].mxu1 }
  0xee   : > { %v579_v13 = vadd.f32 %v578_v12, %v506_v11  ;;  %v1501_v14 = vpop.f32.mrb[1].mxu1 }
  0xf0   : > { %v1880_v15 = vmax.f32 %v579_v13, 0.0 }
  0xf2   : > { %592 = vrot.lane.b32.xlu1 %v1880_v15, %s1771_s30  ;;  %585 = vrot.lane.b32.xlu0 %v1880_v15, %s1772_s12  ;;  %v617_v45 = vmul.f32 %v1938_v37, %v1880_v15 }
  0xf6   : > { %599 = vrot.lane.b32.xlu1 %v1880_v15, %s1773_s13  ;;  %606 = vrot.lane.b32.xlu0 %v1880_v15, %s1774_s14 }
  0xfa   : > { %618 = vrot.lane.b32.xlu1 %v1880_v15, %s1775_s15  ;;  %625 = vrot.lane.b32.xlu0 %v1880_v15, %s1776_s16 }
  0xfe   : > { %632 = vrot.lane.b32.xlu1 %v1880_v15, %s2202_s24  ;;  %639 = vrot.lane.b32.xlu0 %v1880_v15, %s2203_s25 }
 0x102   : > { %648 = vperm.xlu1 %1758, %v584_v16  }
 0x164   : > { %v593_v26 = vpop.permute.xlu1 %592  ;;  %v586_v27 = vpop.permute.xlu0 %585 }
 0x165   : > { %v598_v30 = vmul.f32 %v1917_v23, %v593_v26  ;;  %v591_v31 = vmul.f32 %v1921_v24, %v586_v27 }
 0x167   : > { %v1647_v34 = vpack.c.bf16 %v598_v30, %v591_v31 }
 0x168   : > { %v600_v35 = vpop.permute.xlu1 %599  ;;  %v607_v36 = vpop.permute.xlu0 %606 }
 0x169   : > { %v605_v39 = vmul.f32 %v1926_v28, %v600_v35  ;;  %v612_v40 = vmul.f32 %v1933_v32, %v607_v36  ;;  %1648 = vmatpush3.bf16.msra.mxu1 %v1647_v34  ;;  %v1409_v36 = vld [vmem:[%s1974_s26 + $0x8] sm:$0xff] }
 0x16a   : > { %1649 = vmatprep.subr.bf16.mxu1 %v1767_v0 }
 0x16b   : > { %v1650_v43 = vpack.c.bf16 %v612_v40, %v605_v39  ;;  %v943_v39 = vld [vmem:[%s2199_s9] sm:$0xff]  ;;  %v944_v40 = vld [vmem:[%s2199_s9 + $0x8] sm:$0xff] }
 0x16c   : > { %v619_v44 = vpop.permute.xlu1 %618  ;;  %v626_v49 = vpop.permute.xlu0 %625 }
 0x16d   : > { %v624_v46 = vmul.f32 %v1945_v41, %v619_v44  ;;  %1651 = vmatpush3.bf16.msra.mxu1 %v1650_v43  ;;  %v631_v52 = vmul.f32 %v1954_v47, %v626_v49  ;;  %v945_v43 = vld [vmem:[%s2199_s9 + $0x10] sm:$0xff]  ;;  %v1671_v44 = vpack.c.bf16 %v944_v40, %v943_v39  ;;  %v947_v49 = vld [vmem:[%s2199_s9 + $0x20] sm:$0xff] }
 0x16e   : > { %1652 = vmatprep.subr.bf16.mxu1 %v1767_v0 }
 0x16f   : > { %v1653_v50 = vpack.c.bf16 %v624_v46, %v617_v45  ;;  %v946_v45 = vld [vmem:[%s2199_s9 + $0x18] sm:$0xff] }
 0x170   : > { %v633_v51 = vpop.permute.xlu1 %632  ;;  %v640_v56 = vpop.permute.xlu0 %639  ;;  %v1674_v46 = vpack.c.bf16 %v946_v45, %v945_v43 }
 0x171   : > { %v638_v53 = vmul.f32 %v1958_v48, %v633_v51  ;;  %1654 = vmatpush3.bf16.msra.mxu1 %v1653_v50  ;;  %v645_v57 = vmul.f32 %v1967_v55, %v640_v56  ;;  %v948_v50 = vld [vmem:[%s2199_s9 + $0x28] sm:$0xff]  ;;  %v951_v56 = vld [vmem:[%s2199_s9 + $0x40] sm:$0xff] }
 0x172   : > { %1655 = vmatprep.subr.bf16.mxu1 %v1767_v0  ;;  %v1677_v51 = vpack.c.bf16 %v948_v50, %v947_v49 }
 0x173   : > { %v1656_v54 = vpack.c.bf16 %v638_v53, %v631_v52  ;;  %v949_v52 = vld [vmem:[%s2199_s9 + $0x30] sm:$0xff]  ;;  %v950_v53 = vld [vmem:[%s2199_s9 + $0x38] sm:$0xff] }
 0x175   : > { %1657 = vmatpush3.bf16.msra.mxu1 %v1656_v54  ;;  %v1680_v54 = vpack.c.bf16 %v950_v53, %v949_v52 }
 0x176   : > { %1518 = vmatprep.subr.mxu1 %v1769_v1 }
 0x179   : > { %1519 = vmatpush3.msra.mxu1 %v645_v57  ;;  %v952_v57 = vld [vmem:[%s2199_s9 + $0x48] sm:$0xff] }
 0x17a   : > { %1521 = vmatmul.mubr.msk.f32.vlgmr.msra.gmra.mrb[2].mxu1 %vm651_vm2, %v583_v58  ;;  %1544 = vmatprep.subr.mxu1 %v1769_v1  ;;  %v1683_v58 = vpack.c.bf16 %v952_v57, %v951_v56 }
 0x17b   : > { %1545 = vmatpush3.msra.mxu1 %v1880_v15  ;;  %1546 = vmatprep.mubr.msk.f32.mxu1 %vm1768_vm0, %v1769_v1 }
 0x17c   : > { %1670 = vmatprep.subr.bf16.mxu1 %v1767_v0 }
 0x17e   : > { %1547 = vmatmul.mubr.msk.f32.vlgmr.msra.gmra.mrb[4].mxu1 %vm868_vm3, %v867_v3 }
 0x17f   : > { %1581 = vmatprep.mubr.msk.f32.mxu1 %vm1768_vm0, %v1769_v1  ;;  %1672 = vmatpush3.bf16.msra.mxu1 %v1671_v44 }
 0x180   : > { %1673 = vmatprep.subr.bf16.mxu1 %v1767_v0 }
 0x181   : > { %v649_v59 = vpop.permute.xlu1 %648 }
 0x183   : > { %1675 = vmatpush3.bf16.msra.mxu1 %v1674_v46 }
 0x184   : > { %1676 = vmatprep.subr.bf16.mxu1 %v1767_v0 }
 0x187   : > { %1678 = vmatpush3.bf16.msra.mxu1 %v1677_v51 }
 0x188   : > { %1679 = vmatprep.subr.bf16.mxu1 %v1767_v0 }
 0x18b   : > { %1681 = vmatpush3.bf16.msra.mxu1 %v1680_v54 }
 0x18c   : > { %1682 = vmatprep.subr.bf16.mxu1 %v1767_v0 }
 0x18f   : > { %1684 = vmatpush3.bf16.msra.mxu1 %v1683_v58 }
 0x190   : > { %1685 = vmatprep.subr.bf16.mxu1 %v1767_v0 }
 0x24d   : > { %v721_v60 = vpop.f32.mrb[2].mxu1 }
 0x24e   : > { %v722_v61 = vadd.f32 %v721_v60, %v649_v59  ;;  %v1522_v62 = vpop.f32.mrb[3].mxu1 }
 0x24f   : > { %v954_v62 = vld [vmem:[%s2199_s9 + $0x58] sm:$0xff] }
 0x250   : > { %v725_v63 = vmax.f32 %v722_v61, 0.0  ;;  %v953_v61 = vld [vmem:[%s2199_s9 + $0x50] sm:$0xff] }
 0x251   : > { %v1686_v3 = vpack.c.bf16 %v954_v62, %v953_v61 }
 0x252   : > { %733 = vrot.lane.b32.xlu1 %v725_v63, %s1771_s30  ;;  %730 = vrot.lane.b32.xlu0 %v725_v63, %s1772_s12  ;;  %v742_v15 = vmul.f32 %v725_v63, %v1938_v37 }
 0x253   : > { %1687 = vmatpush3.bf16.msra.mxu1 %v1686_v3 }
 0x254   : > { %1688 = vmatprep.subr.bf16.mxu1 %v1767_v0 }
 0x256   : > { %739 = vrot.lane.b32.xlu1 %v725_v63, %s1774_s14  ;;  %736 = vrot.lane.b32.xlu0 %v725_v63, %s1773_s13 }
 0x25a   : > { %746 = vrot.lane.b32.xlu1 %v725_v63, %s1776_s16  ;;  %743 = vrot.lane.b32.xlu0 %v725_v63, %s1775_s15 }
 0x25e   : > { %752 = vrot.lane.b32.xlu1 %v725_v63, %s2203_s25  ;;  %749 = vrot.lane.b32.xlu0 %v725_v63, %s2202_s24  ;;  %s2205_s25 = smov 120  }
 0x262   : > { %757 = vperm.xlu0 %1757, %v1410_v2  }
 0x2c4   : > { %v734_v4 = vpop.permute.xlu1 %733  ;;  %v731_v5 = vpop.permute.xlu0 %730 }
 0x2c5   : > { %v735_v6 = vmul.f32 %v734_v4, %v1917_v23  ;;  %v732_v7 = vmul.f32 %v731_v5, %v1921_v24  ;;  %v955_v5 = vld [vmem:[%s2199_s9 + $0x60] sm:$0xff] }
 0x2c7   : > { %v1659_v8 = vpack.c.bf16 %v735_v6, %v732_v7  ;;  %v956_v6 = vld [vmem:[%s2199_s9 + $0x68] sm:$0xff] }
 0x2c8   : > { %v740_v9 = vpop.permute.xlu1 %739  ;;  %v737_v10 = vpop.permute.xlu0 %736  ;;  %v1689_v7 = vpack.c.bf16 %v956_v6, %v955_v5 }
 0x2c9   : > { %v741_v11 = vmul.f32 %v740_v9, %v1933_v32  ;;  %v738_v12 = vmul.f32 %v737_v10, %v1926_v28  ;;  %1660 = vmatpush3.bf16.msra.mxu0 %v1659_v8  ;;  %v957_v8 = vld [vmem:[%s2199_s9 + $0x70] sm:$0xff]  ;;  %v958_v9 = vld [vmem:[%s2199_s9 + $0x78] sm:$0xff] }
 0x2ca   : > { %1661 = vmatprep.subr.bf16.mxu0 %v1767_v0  ;;  %1690 = vmatpush3.bf16.msra.mxu1 %v1689_v7  ;;  %v1692_v10 = vpack.c.bf16 %v958_v9, %v957_v8 }
 0x2cb   : > { %v1662_v13 = vpack.c.bf16 %v741_v11, %v738_v12  ;;  %1691 = vmatprep.subr.bf16.mxu1 %v1767_v0  ;;  %v938_v11 = vpop.f32.mrb[4].mxu1 }
 0x2cc   : > { %v744_v14 = vpop.permute.xlu0 %743  ;;  %v747_v17 = vpop.permute.xlu1 %746 }
 0x2cd   : > { %v745_v16 = vmul.f32 %v744_v14, %v1945_v41  ;;  %1663 = vmatpush3.bf16.msra.mxu0 %v1662_v13  ;;  %v748_v27 = vmul.f32 %v747_v17, %v1954_v47  ;;  %v1548_v12 = vpop.f32.mrb[5].mxu1  ;;  %v959_v13 = vld [vmem:[%s488_s18] sm:$0xff] }
 0x2ce   : > { %1664 = vmatprep.subr.bf16.mxu0 %v1767_v0  ;;  %1693 = vmatpush3.bf16.msra.mxu1 %v1692_v10 }
 0x2cf   : > { %v1665_v21 = vpack.c.bf16 %v745_v16, %v742_v15 }
 0x2d0   : > { %v750_v26 = vpop.permute.xlu0 %749  ;;  %v753_v34 = vpop.permute.xlu1 %752 }
 0x2d1   : > { %v751_v30 = vmul.f32 %v750_v26, %v1958_v48  ;;  %1666 = vmatpush3.bf16.msra.mxu0 %v1665_v21  ;;  %v754_v35 = vmul.f32 %v1967_v55, %v753_v34 }
 0x2d2   : > { %1667 = vmatprep.subr.bf16.mxu0 %v1767_v0 }
 0x2d3   : > { %v1668_v31 = vpack.c.bf16 %v751_v30, %v748_v27 }
 0x2d5   : > { %1669 = vmatpush3.bf16.msra.mxu0 %v1668_v31 }
 0x2d6   : > { %1539 = vmatprep.subr.mxu0 %v1769_v1 }
 0x2d9   : > { %1540 = vmatpush3.msra.mxu0 %v754_v35 }
 0x2da   : > { %1542 = vmatmul.mubr.msk.f32.vlgmr.msra.gmra.mrb[0].mxu0 %vm651_vm2, %v1409_v36  ;;  %1694 = vmatprep.subr.bf16.mxu0 %v1767_v0 }
 0x2db   : > { %1602 = vmatprep.mubr.msk.f32.mxu0 %vm1768_vm0, %v1769_v1 }
 0x2e1   : > { %v758_v59 = vpop.permute.xlu0 %757 }
 0x3ad   : > { %v829_v60 = vpop.f32.mrb[0].mxu0 }
 0x3ae   : > { %v830_v63 = vadd.f32 %v829_v60, %v758_v59  ;;  %v1543_v2 = vpop.f32.mrb[1].mxu0 }
 0x3b0   : > { %v833_v4 = vmax.f32 %v830_v63, 0.0 }
 0x3b2   : > { %837 = vrot.lane.b32.xlu0 %v833_v4, %s1771_s30  ;;  %834 = vrot.lane.b32.xlu1 %v833_v4, %s1772_s12  ;;  %v846_v40 = vmul.f32 %v833_v4, %v1938_v37 }
 0x3b6   : > { %843 = vrot.lane.b32.xlu0 %v833_v4, %s1774_s14  ;;  %840 = vrot.lane.b32.xlu1 %v833_v4, %s1773_s13  ;;  %s1779_s13 = smov 4  }
 0x3ba   : > { %850 = vrot.lane.b32.xlu0 %v833_v4, %s1776_s16  ;;  %847 = vrot.lane.b32.xlu1 %v833_v4, %s1775_s15  ;;  %s1780_s16 = smov 5  }
 0x3be   : > { %856 = vrot.lane.b32.xlu0 %v833_v4, %s2204_s19  ;;  %853 = vrot.lane.b32.xlu1 %v833_v4, %s2205_s25 }
 0x3c2   : > { %962 = vperm.xlu1 %1758, %v959_v13  }
 0x424   : > { %v838_v14 = vpop.permute.xlu0 %837  ;;  %v835_v15 = vpop.permute.xlu1 %834 }
 0x425   : > { %v839_v16 = vmul.f32 %v838_v14, %v1917_v23  ;;  %v836_v17 = vmul.f32 %v835_v15, %v1921_v24 }
 0x427   : > { %v859_v27 = vmax.f32 %v836_v17, %v839_v16  ;;  %v1413_v16 = vld [vmem:[%s1974_s26 + $0x10] sm:$0xff] }
 0x428   : > { %v844_v21 = vpop.permute.xlu0 %843  ;;  %v841_v26 = vpop.permute.xlu1 %840 }
 0x429   : > { %v842_v30 = vmul.f32 %v841_v26, %v1926_v28  ;;  %v845_v31 = vmul.f32 %v844_v21, %v1933_v32  ;;  %v1181_v21 = vld [vmem:[%s2200_s10 + $0x10] sm:$0xff]  ;;  %v1182_v26 = vld [vmem:[%s2200_s10 + $0x18] sm:$0xff] }
 0x42b   : > { %v860_v34 = vmax.f32 %v859_v27, %v842_v30  ;;  %v1710_v27 = vpack.c.bf16 %v1182_v26, %v1181_v21  ;;  %v1183_v30 = vld [vmem:[%s2200_s10 + $0x20] sm:$0xff] }
 0x42c   : > { %v851_v35 = vpop.permute.xlu0 %850  ;;  %v848_v36 = vpop.permute.xlu1 %847 }
 0x42d   : > { %v861_v39 = vmax.f32 %v860_v34, %v845_v31  ;;  %v849_v43 = vmul.f32 %v848_v36, %v1945_v41  ;;  %v852_v23 = vmul.f32 %v851_v35, %v1954_v47  ;;  %v1414_v47 = vld [vmem:[%s1900_s22 + $0x10] sm:$0xff]  ;;  %v1184_v31 = vld [vmem:[%s2200_s10 + $0x28] sm:$0xff]  ;;  %s492_s22 = scalar_lea.vmem %s2201_s11, %s1866_s23 }
 0x42e   : > { %v1713_v34 = vpack.c.bf16 %v1184_v31, %v1183_v30  ;;  %v1185_v35 = vld [vmem:[%s2200_s10 + $0x30] sm:$0xff] }
 0x42f   : > { %v862_v44 = vmax.f32 %v861_v39, %v846_v40  ;;  %v1187_v39 = vld [vmem:[%s2200_s10 + $0x40] sm:$0xff]  ;;  %v1188_v40 = vld [vmem:[%s2200_s10 + $0x48] sm:$0xff] }
 0x430   : > { %v854_v45 = vpop.permute.xlu1 %853  ;;  %v857_v46 = vpop.permute.xlu0 %856 }
 0x431   : > { %v863_v24 = vmax.f32 %v862_v44, %v849_v43  ;;  %v855_v49 = vmul.f32 %v854_v45, %v1958_v48  ;;  %v858_v28 = vmul.f32 %v1967_v55, %v857_v46  ;;  %v495_v48 = vld [vmem:[%s2198_s8] sm:$0xff]  ;;  %v1719_v43 = vpack.c.bf16 %v1188_v40, %v1187_v39  ;;  %v1189_v44 = vld [vmem:[%s2200_s10 + $0x50] sm:$0xff]  ;;  %v1190_v45 = vld [vmem:[%s2200_s10 + $0x58] sm:$0xff] }
 0x432   : > { %v1051_v55 = vrot.slane %v495_v48, %v596_v19  ;;  %v1044_v56 = vrot.slane %v495_v48, %v589_v20  ;;  %v1065_v61 = vrot.slane %v495_v48, %v610_v25  ;;  %v1058_v62 = vrot.slane %v495_v48, %v603_v22  ;;  %v1192_v46 = vld [vmem:[%s2200_s10 + $0x68] sm:$0xff] }
 0x433   : > { %v864_v50 = vmax.f32 %v863_v24, %v852_v23  ;;  %v1070_v19 = vrot.slane %v495_v48, %v615_v29  ;;  %v1077_v20 = vrot.slane %v495_v48, %v622_v33  ;;  %v1084_v25 = vrot.slane %v495_v48, %v629_v38  ;;  %v1415_v38 = vld [vmem:[%s2198_s8 + $0x8] ss:$0 sm:$0xff]  ;;  %v1191_v24 = vld [vmem:[%s2200_s10 + $0x60] sm:$0xff] }
 0x434   : > { %v1091_v9 = vrot.slane %v495_v48, %v636_v42  ;;  %v1180_v42 = vld [vmem:[%s2200_s10 + $0x8] sm:$0xff]  ;;  %v1722_v23 = vpack.c.bf16 %v1190_v45, %v1189_v44 }
 0x435   : > { %v865_v32 = vmax.f32 %v864_v50, %v855_v49  ;;  %v1707_v17 = vpack.c.bf16 %v1180_v42, %v1179_v18  ;;  %v1725_v49 = vpack.c.bf16 %v1192_v46, %v1191_v24  ;;  %v1193_v50 = vld [vmem:[%s2200_s10 + $0x70] sm:$0xff] }
 0x437   : > { %v866_v51 = vmax.f32 %v865_v32, %v858_v28  ;;  %v1194_v28 = vld [vmem:[%s2200_s10 + $0x78] sm:$0xff] }
 0x438   : > { %v1728_v32 = vpack.c.bf16 %v1194_v28, %v1193_v50 }
 0x439   : > { %v942_v52 = vadd.f32 %v938_v11, %v866_v51 }
 0x43b   : > { %1582 = vmatmul.mubr.f32.vlgmr.msra.gmra.mrb[6].mxu1 %v942_v52 }
 0x441   : > { %v963_v53 = vpop.permute.xlu1 %962 }
 0x50e   : > { %v1031_v54 = vpop.f32.mrb[6].mxu1 }
 0x50f   : > { %v1032_v37 = vadd.f32 %v1031_v54, %v963_v53  ;;  %v1583_v41 = vpop.f32.mrb[7].mxu1 }
 0x511   : > { %1046 = vrot.lane.b32.xlu1 %v1032_v37, %s1779_s13  ;;  %1039 = vrot.lane.b32.xlu0 %v1032_v37, %s1780_s16  ;;  %v1071_v22 = vmul.f32 %v1070_v19, %v1032_v37 }
 0x515   : > { %1060 = vrot.lane.b32.xlu1 %v1032_v37, %s1774_s14  ;;  %1053 = vrot.lane.b32.xlu0 %v1032_v37, %s1781_s27 }
 0x519   : > { %1079 = vrot.lane.b32.xlu1 %v1032_v37, %s1782_s28  ;;  %1072 = vrot.lane.b32.xlu0 %v1032_v37, %s1775_s15 }
 0x51d   : > { %1093 = vrot.lane.b32.xlu1 %v1032_v37, %s1783_s29  ;;  %1086 = vrot.lane.b32.xlu0 %v1032_v37, %s1784_s20 }
 0x521   : > { %1102 = vperm.xlu0 %1757, %v1414_v47  }
 0x583   : > { %v1047_v57 = vpop.permute.xlu1 %1046  ;;  %v1040_v58 = vpop.permute.xlu0 %1039 }
 0x584   : > { %v1052_v59 = vmul.f32 %v1051_v55, %v1047_v57  ;;  %v1045_v60 = vmul.f32 %v1044_v56, %v1040_v58 }
 0x586   : > { %v1695_v63 = vpack.c.bf16 %v1052_v59, %v1045_v60 }
 0x587   : > { %v1061_v2 = vpop.permute.xlu1 %1060  ;;  %v1054_v3 = vpop.permute.xlu0 %1053 }
 0x588   : > { %v1066_v4 = vmul.f32 %v1065_v61, %v1061_v2  ;;  %v1059_v5 = vmul.f32 %v1058_v62, %v1054_v3  ;;  %1696 = vmatpush3.bf16.msra.mxu0 %v1695_v63 }
 0x589   : > { %1697 = vmatprep.subr.bf16.mxu0 %v1767_v0 }
 0x58a   : > { %v1698_v6 = vpack.c.bf16 %v1066_v4, %v1059_v5 }
 0x58b   : > { %v1073_v7 = vpop.permute.xlu0 %1072  ;;  %v1080_v10 = vpop.permute.xlu1 %1079 }
 0x58c   : > { %v1078_v8 = vmul.f32 %v1077_v20, %v1073_v7  ;;  %1699 = vmatpush3.bf16.msra.mxu0 %v1698_v6  ;;  %v1085_v33 = vmul.f32 %v1084_v25, %v1080_v10 }
 0x58d   : > { %1700 = vmatprep.subr.bf16.mxu0 %v1767_v0 }
 0x58e   : > { %v1701_v29 = vpack.c.bf16 %v1078_v8, %v1071_v22 }
 0x58f   : > { %v1087_v11 = vpop.permute.xlu0 %1086  ;;  %v1094_v14 = vpop.permute.xlu1 %1093 }
 0x590   : > { %v1092_v12 = vmul.f32 %v1091_v9, %v1087_v11  ;;  %1702 = vmatpush3.bf16.msra.mxu0 %v1701_v29  ;;  %v1099_v15 = vmul.f32 %v1415_v38, %v1094_v14 }
 0x591   : > { %1703 = vmatprep.subr.bf16.mxu0 %v1767_v0 }
 0x592   : > { %v1704_v13 = vpack.c.bf16 %v1092_v12, %v1085_v33 }
 0x594   : > { %1705 = vmatpush3.bf16.msra.mxu0 %v1704_v13 }
 0x595   : > { %1600 = vmatprep.subr.mxu0 %v1769_v1 }
 0x598   : > { %1601 = vmatpush3.msra.mxu0 %v1099_v15 }
 0x599   : > { %1603 = vmatmul.mubr.msk.f32.vlgmr.msra.gmra.mrb[2].mxu0 %vm651_vm2, %v1413_v16  ;;  %1706 = vmatprep.subr.bf16.mxu0 %v1767_v0 }
 0x59a   : > { %1708 = vmatpush3.bf16.msra.mxu0 %v1707_v17  ;;  %1637 = vmatprep.mubr.msk.f32.mxu0 %vm1768_vm0, %v1769_v1  ;;  %v1186_v1 = vld [vmem:[%s2200_s10 + $0x38] sm:$0xff] }
 0x59b   : > { %1709 = vmatprep.subr.bf16.mxu0 %v1767_v0  ;;  %v1716_v36 = vpack.c.bf16 %v1186_v1, %v1185_v35 }
 0x59e   : > { %1711 = vmatpush3.bf16.msra.mxu0 %v1710_v27 }
 0x59f   : > { %1712 = vmatprep.subr.bf16.mxu0 %v1767_v0 }
 0x5a0   : > { %v1103_v51 = vpop.permute.xlu0 %1102 }
 0x5a2   : > { %1714 = vmatpush3.bf16.msra.mxu0 %v1713_v34 }
 0x5a3   : > { %1715 = vmatprep.subr.bf16.mxu0 %v1767_v0 }
 0x5a6   : > { %1717 = vmatpush3.bf16.msra.mxu0 %v1716_v36 }
 0x5a7   : > { %1718 = vmatprep.subr.bf16.mxu0 %v1767_v0 }
 0x5aa   : > { %1720 = vmatpush3.bf16.msra.mxu0 %v1719_v43 }
 0x5ab   : > { %1721 = vmatprep.subr.bf16.mxu0 %v1767_v0 }
 0x5ae   : > { %1723 = vmatpush3.bf16.msra.mxu0 %v1722_v23 }
 0x5af   : > { %1724 = vmatprep.subr.bf16.mxu0 %v1767_v0 }
 0x5b2   : > { %1726 = vmatpush3.bf16.msra.mxu0 %v1725_v49 }
 0x5b3   : > { %1727 = vmatprep.subr.bf16.mxu0 %v1767_v0 }
 0x5b6   : > { %1729 = vmatpush3.bf16.msra.mxu0 %v1728_v32 }
 0x66c   : > { %v1174_v52 = vpop.f32.mrb[2].mxu0 }
 0x66d   : > { %v1175_v53 = vadd.f32 %v1174_v52, %v1103_v51  ;;  %v1604_v54 = vpop.f32.mrb[3].mxu0 }
 0x66f   : > { %v1178_v37 = vmax.f32 %v1175_v53, 0.0 }
 0x671   : > { %1638 = vmatmul.mubr.f32.vlgmr.msra.gmra.mrb[4].mxu0 %v1178_v37 }
 0x744   : > { %v1261_v0 = vpop.f32.mrb[4].mxu0 }
 0x745   : > { %1266 = vst.msk [vmem:[%s492_s22] sm:$0xff] %vm1265_vm4, %v1261_v0  ;;  %v1639_v41 = vpop.f32.mrb[5].mxu0 }
 0x746 PF: > { %s21_s17 = sadd.s32 1, %s1765_s17  }
 0x747   : > { %p18_p4 = scmp.ge.s32.totalorder %s21_s17, 4  }
 0x749   :  { %20 = sbr.rel (!%p18_p4) target bundleno = 1 (0x1), region = 116 }

</bundles_post_ra>
